<compile_context>
chip_gen: v5e
topology: v5e:2x2
jax: 0.10.0
libtpu: 0.0.40
codegen_flags: <defaults>
</compile_context>

<pallas_src>
import jax
import jax.numpy as jnp
from jax.experimental import pallas as pl
from jax.experimental.pallas import tpu as pltpu


def _relu_kernel(x_ref, o_ref):
    # Elementwise max(x, 0) on the full VMEM tile (VPU).  Scalar zero avoids
    # materializing a zero tile.
    o_ref[...] = jnp.maximum(x_ref[...], 0)


def _sublane_multiple(dtype) -> int:
    # Minimum second-to-last-dim granularity: 8 for 32-bit, 16 for 16-bit,
    # 32 for 8-bit dtypes.
    itemsize = jnp.dtype(dtype).itemsize
    return max(8, 32 // itemsize)


def _choose_lanes(n: int, sub: int) -> int:
    """Pick a wide lane-dense last dim; prefer widths needing no padding."""
    candidates = [2048, 1024, 512, 256, 128]
    # Only widths that still give at least one full sublane-block of rows
    # (avoids heavy over-padding of tiny inputs).
    usable = [c for c in candidates if n >= c * sub] or [128]
    for c in usable:
        if n % c == 0 and (n // c) % sub == 0:
            return c  # exact fit: no padding, sublane-aligned rows
    return usable[0]


def relu_pallas(x: jax.Array, *, target_block_bytes: int = 2 * 1024 * 1024) -> jax.Array:
    """Elementwise ReLU, semantics identical to torch.nn.ReLU()(x)."""
    orig_shape = x.shape
    dtype = x.dtype
    n = x.size
    if n == 0:
        return x

    itemsize = jnp.dtype(dtype).itemsize
    sub = _sublane_multiple(dtype)

    lanes = _choose_lanes(n, sub)
    rows = pl.cdiv(n, lanes)

    # Block rows targeting ~target_block_bytes per buffer, rounded to the
    # dtype's sublane multiple, capped at the (sublane-aligned) row count.
    tile_rows = max(sub, ((target_block_bytes // (lanes * itemsize)) // sub) * sub)
    tile_rows = min(tile_rows, pl.cdiv(rows, sub) * sub)

    # Pad rows up so the grid divides evenly (never collapse to a single
    # oversized full-extent block).
    rows_padded = pl.cdiv(rows, tile_rows) * tile_rows
    pad = rows_padded * lanes - n

    flat = x.reshape(-1)
    if pad:
        flat = jnp.pad(flat, (0, pad))
    x2d = flat.reshape(rows_padded, lanes)

    grid = (rows_padded // tile_rows,)

    out2d = pl.pallas_call(
        _relu_kernel,
        out_shape=jax.ShapeDtypeStruct((rows_padded, lanes), dtype),
        grid_spec=pltpu.PrefetchScalarGridSpec(
            num_scalar_prefetch=0,
            grid=grid,
            in_specs=[pl.BlockSpec((tile_rows, lanes), lambda i: (i, 0))],
            out_specs=pl.BlockSpec((tile_rows, lanes), lambda i: (i, 0)),
        ),
        compiler_params=pltpu.CompilerParams(
            dimension_semantics=("parallel",),
        ),
    )(x2d)

    out_flat = out2d.reshape(-1)
    if pad:
        out_flat = out_flat[:n]
    return out_flat.reshape(orig_shape)


if __name__ == "__main__":
    key = jax.random.PRNGKey(0)

    # Primary case: matches the module's test_data shape torch.rand(1, 64, 64, 3).
    x = jax.random.uniform(key, (1, 64, 64, 3), dtype=jnp.float32) * 2.0 - 1.0
    y = relu_pallas(x)
    jax.block_until_ready(y)
    y_ref = jnp.maximum(x, 0.0)
    assert y.shape == x.shape and y.dtype == x.dtype
    assert jnp.allclose(y, y_ref), "mismatch vs reference ReLU (f32 main shape)"

    # Ragged shape: exercises the pad-rows path.
    k1, k2 = jax.random.split(key)
    xr = jax.random.normal(k1, (2, 3, 17, 5), dtype=jnp.float32)
    yr = relu_pallas(xr)
    jax.block_until_ready(yr)
    assert jnp.allclose(yr, jnp.maximum(xr, 0.0)), "mismatch (ragged f32)"

    # bf16 case: exercises dtype-aware sublane rounding.
    xb = (jax.random.normal(k2, (64, 384), dtype=jnp.float32)).astype(jnp.bfloat16)
    yb = relu_pallas(xb)
    jax.block_until_ready(yb)
    assert yb.dtype == jnp.bfloat16
    assert jnp.array_equal(yb, jnp.maximum(xb, jnp.bfloat16(0))), "mismatch (bf16)"

    print("KERNEL_OK")
</pallas_src>

<mosaic_0001>
module attributes {stable_mosaic.version = 11 : i64} {
  func.func @_relu_kernel(%arg0: i32, %arg1: memref<24x512xf32, #tpu.memory_space<vmem>>, %arg2: memref<24x512xf32, #tpu.memory_space<vmem>>) attributes {dimension_semantics = [#tpu.dimension_semantics<parallel>], iteration_bounds = array<i64: 1>, scalar_prefetch = 0 : i64, scratch_operands = 0 : i64, tpu.core_type = #tpu.core_type<tc>, window_params = [{transform_indices = @transform_0, window_bounds = array<i64: 24, 512>}, {transform_indices = @transform_1, window_bounds = array<i64: 24, 512>}]} {
    %c0 = arith.constant 0 : index
    %c0_0 = arith.constant 0 : index
    %0 = vector.load %arg1[%c0, %c0_0] : memref<24x512xf32, #tpu.memory_space<vmem>>, vector<24x512xf32>
    %cst = arith.constant 0.000000e+00 : f32
    %1 = vector.broadcast %cst : f32 to vector<24x512xf32>
    %2 = arith.maximumf %0, %1 : vector<24x512xf32>
    %c0_1 = arith.constant 0 : index
    %c0_2 = arith.constant 0 : index
    %3 = vector.load %arg2[%c0_1, %c0_2] : memref<24x512xf32, #tpu.memory_space<vmem>>, vector<24x512xf32>
    tpu.vector_store %arg2[%c0_1, %c0_2], %2 {strides = array<i32>} : memref<24x512xf32, #tpu.memory_space<vmem>>, vector<24x512xf32>,
    return
  }
  func.func @transform_0(%arg0: i32) -> (i32, i32) {
    %c0_i32 = arith.constant 0 : i32
    %c0_i32_0 = arith.constant 0 : i32
    return %arg0, %c0_i32 : i32, i32
  }
  func.func @transform_1(%arg0: i32) -> (i32, i32) {
    %c0_i32 = arith.constant 0 : i32
    %c0_i32_0 = arith.constant 0 : i32
    return %arg0, %c0_i32 : i32, i32
  }
}

</mosaic_0001>

<bundles_post_ra>
// kernel: tpu_custom_call.1
= control target key start
LH: loop header
LB: loop body
LE: loop exit
PB: predicated region body
PF: predicated region fallthrough
CT: control target
= control target key end

     0   :  { %6 = vsyncpa [#allocation3], 0  ;;  %s162_s0 = inlined_call_operand.hbm [shape: f32[24,512], index: 0, kind: input, shape index: {}]   ;;  %s163_s1 = inlined_call_operand.hbm [shape: f32[24,512], index: 1, kind: output, shape index: {}]  }
   0x1   :  { %7 = vsyncpa [#allocation4], 0  ;;  %s12_s8 = sshll.u32 %s162_s0, 4  ;;  %s136_s9 = smov [#allocation2]   ;;  %s13_s8 = int_to_ptr.hbm [resolvable:$true] %s12_s8 }
   0x2   :  { %s14_s10 = sshll.u32 %s136_s9, 4  ;;  %s137_s11 = smov 512   ;;  %s15_s10 = int_to_ptr.vmem [resolvable:$true] %s14_s10 }
   0x3   :  { %s138_s12 = smov 32  }
   0x4   :  { %20 = dma.hbm_to_vmem [thread:$0]  %s13_s8, 1536, %s15_s10, [#allocation3], %s137_s11, %s137_s11, %s138_s12  }
   0x5   :  { %132 = dma.done.wait [#allocation3], 1536  }
   0x6   :  { %133 = vsyncadd [#allocation3], 4294965760  ;;  %v25_v0 = vld [vmem:[#allocation2] sm:$0xff]  ;;  %v26_v1 = vld [vmem:[#allocation2 + $0x8] sm:$0xff]  ;;  %s139_s0 = smov [#allocation5]   ;;  %s67_s16 = sshll.u32 %s163_s1, 4  ;;  %s68_s16 = int_to_ptr.hbm [resolvable:$true] %s67_s16 }
   0x7   :  { %v27_v2 = vld [vmem:[#allocation2 + $0x10] sm:$0xff]  ;;  %v37_v3 = vmax.f32 %v25_v0, 0.0  ;;  %v38_v4 = vmax.f32 %v26_v1, 0.0  ;;  %v28_v6 = vld [vmem:[#allocation2 + $0x18] sm:$0xff]  ;;  %v29_v7 = vld [vmem:[#allocation2 + $0x20] sm:$0xff]  ;;  %s65_s13 = sshll.u32 %s139_s0, 4  ;;  %s66_s13 = int_to_ptr.vmem [resolvable:$true] %s65_s13 }
   0x8   :  { %v39_v5 = vmax.f32 %v27_v2, 0.0  ;;  %v30_v8 = vld [vmem:[#allocation2 + $0x28] sm:$0xff]  ;;  %v40_v9 = vmax.f32 %v28_v6, 0.0  ;;  %v31_v10 = vld [vmem:[#allocation2 + $0x30] sm:$0xff]  ;;  %v41_v11 = vmax.f32 %v29_v7, 0.0  ;;  %v32_v12 = vld [vmem:[#allocation2 + $0x38] sm:$0xff] }
   0x9   :  { %49 = vst [vmem:[#allocation5] sm:$0xff] %v37_v3  ;;  %v42_v13 = vmax.f32 %v30_v8, 0.0  ;;  %v33_v14 = vld [vmem:[#allocation2 + $0x40] sm:$0xff]  ;;  %v43_v15 = vmax.f32 %v31_v10, 0.0  ;;  %v34_v16 = vld [vmem:[#allocation2 + $0x48] sm:$0xff]  ;;  %v44_v17 = vmax.f32 %v32_v12, 0.0 }
   0xa   :  { %50 = vst [vmem:[#allocation5 + $0x8] sm:$0xff] %v38_v4  ;;  %v35_v18 = vld [vmem:[#allocation2 + $0x50] sm:$0xff]  ;;  %v45_v19 = vmax.f32 %v33_v14, 0.0  ;;  %v36_v20 = vld [vmem:[#allocation2 + $0x58] sm:$0xff]  ;;  %v46_v21 = vmax.f32 %v34_v16, 0.0 }
   0xb   :  { %51 = vst [vmem:[#allocation5 + $0x10] sm:$0xff] %v39_v5  ;;  %v47_v22 = vmax.f32 %v35_v18, 0.0  ;;  %v48_v23 = vmax.f32 %v36_v20, 0.0 }
   0xc   :  { %52 = vst [vmem:[#allocation5 + $0x18] sm:$0xff] %v40_v9 }
   0xd   :  { %53 = vst [vmem:[#allocation5 + $0x20] sm:$0xff] %v41_v11 }
   0xe   :  { %54 = vst [vmem:[#allocation5 + $0x28] sm:$0xff] %v42_v13 }
   0xf   :  { %55 = vst [vmem:[#allocation5 + $0x30] sm:$0xff] %v43_v15 }
  0x10   :  { %56 = vst [vmem:[#allocation5 + $0x38] sm:$0xff] %v44_v17 }
  0x11   :  { %57 = vst [vmem:[#allocation5 + $0x40] sm:$0xff] %v45_v19 }
  0x12   :  { %58 = vst [vmem:[#allocation5 + $0x48] sm:$0xff] %v46_v21 }
  0x13   :  { %59 = vst [vmem:[#allocation5 + $0x50] sm:$0xff] %v47_v22 }
  0x14   :  { %60 = vst [vmem:[#allocation5 + $0x58] sm:$0xff] %v48_v23 }
  0x15   :  { %73 = dma.vmem_to_hbm [thread:$0]  %s66_s13, 1536, %s68_s16, [#allocation4], %s137_s11, %s137_s11, %s138_s12  }
  0x16   :  { %134 = dma.done.wait [#allocation4], 1536  }
  0x17   :  { %135 = vsyncadd [#allocation4], 4294965760 }
  0x18   :  { %78 = vsyncpa [#allocation3], 1 }
  0x19   :  { %79 = vsyncpa [#allocation4], 1 }

</bundles_post_ra>
